<compile_context>
chip_gen: v5e
topology: v5e:2x2
jax: 0.10.0
libtpu: 0.0.40
codegen_flags: <defaults>
</compile_context>

<pallas_src>
import jax
import jax.numpy as jnp
from jax import lax
from jax.experimental import pallas as pl
from jax.experimental.pallas import tpu as pltpu

_LANE = 128


def _round_up(x, m):
    return ((x + m - 1) // m) * m


# ---------------------------------------------------------------------------
# Pallas kernel: dense sigmoid(Cls) over all anchors (lane- and sublane-dense).
# ---------------------------------------------------------------------------
def _sigmoid_kernel(cls_ref, score_ref):
    # cls_ref / score_ref: (1, TILE_R, 128) f32 tiles.
    x = cls_ref[...]
    score_ref[...] = 1.0 / (1.0 + jnp.exp(-x))


def _sigmoid_scores(cls_flat, *, max_tile_rows=2048):
    """Sigmoid over (B, N) logits via a tiled, lane/sublane-dense Pallas kernel."""
    b, n = cls_flat.shape
    r = pl.cdiv(n, _LANE)                               # rows of 128 anchors
    tile_r = min(max_tile_rows, _round_up(r, 8))        # multiple of 8 sublanes
    r_pad = _round_up(r, tile_r)
    n_pad = r_pad * _LANE
    if n_pad != n:
        # Very negative logit -> sigmoid == 0: padded anchors never beat a real one.
        cls_flat = jnp.pad(cls_flat, ((0, 0), (0, n_pad - n)), constant_values=-1e9)
    x = cls_flat.reshape(b, r_pad, _LANE)

    scores = pl.pallas_call(
        _sigmoid_kernel,
        out_shape=jax.ShapeDtypeStruct((b, r_pad, _LANE), jnp.float32),
        grid=(b, r_pad // tile_r),
        in_specs=[pl.BlockSpec((1, tile_r, _LANE), lambda i, j: (i, j, 0))],
        out_specs=pl.BlockSpec((1, tile_r, _LANE), lambda i, j: (i, j, 0)),
        compiler_params=pltpu.CompilerParams(
            dimension_semantics=("parallel", "parallel")),
    )(x)
    return scores.reshape(b, n_pad)[:, :n]              # (B, N)


# ---------------------------------------------------------------------------
# Small, control-flow heavy tail (<=60 boxes per batch) in plain JAX.
# ---------------------------------------------------------------------------
def _pairwise_iou_3d(boxes):
    # boxes: (K, 6) = [cz, cy, cx, dz, dy, dx]
    ctr, dim = boxes[:, 0:3], boxes[:, 3:6]
    lo = ctr - 0.5 * dim
    hi = ctr + 0.5 * dim
    inter = jnp.clip(jnp.minimum(hi[:, None, :], hi[None, :, :]) -
                     jnp.maximum(lo[:, None, :], lo[None, :, :]), 0.0, None)
    inter_vol = inter[..., 0] * inter[..., 1] * inter[..., 2]
    vol = dim[:, 0] * dim[:, 1] * dim[:, 2]
    union = vol[:, None] + vol[None, :] - inter_vol
    return inter_vol / jnp.maximum(union, 1e-8)


def _greedy_nms(iou, valid, iou_threshold, max_keep):
    # Greedy NMS over candidates already sorted by descending score; invalid
    # (below-threshold) boxes neither get kept nor suppress others.
    k = valid.shape[0]
    rng = jnp.arange(k)

    def body(i, carry):
        supp, keep, cnt = carry
        can = jnp.logical_and(jnp.logical_not(supp[i]), cnt < max_keep)
        keep = keep.at[i].set(can)
        cnt = cnt + can.astype(jnp.int32)
        newly = jnp.logical_and(iou[i] > iou_threshold, rng > i)
        supp = jnp.where(can, jnp.logical_or(supp, newly), supp)
        return supp, keep, cnt

    init = (jnp.logical_not(valid), jnp.zeros((k,), dtype=bool), jnp.int32(0))
    _, keep, _ = jax.lax.fori_loop(0, k, body, init)
    return keep


def _assemble_dets(scores, boxes, keep):
    # scores: (K,), boxes: (K, 6), keep: (K,) bool -> dets (K, 8), -1 padded:
    # row = [flag=1, score, cz, cy, cx, dz, dy, dx]; kept rows compacted to the front
    # in descending-score order, remaining rows are -1 (matches the PyTorch module).
    k = scores.shape[0]
    rows = jnp.concatenate(
        [jnp.ones((k, 1), jnp.float32), scores[:, None], boxes], axis=1)
    order = jnp.argsort(jnp.logical_not(keep), stable=True)
    rows = rows[order]
    keep_sorted = keep[order]
    return jnp.where(keep_sorted[:, None], rows, -1.0)


def detection_postprocess(cls, shape, offset, *, crop_size=(64, 96, 96),
                          topk=60, threshold=0.15, nms_threshold=0.05, nms_topk=20):
    """JAX/Pallas equivalent of Detection_Postprocess.forward.

    cls:    (B, 1, D, H, W) raw logits
    shape:  (B, 3, D, H, W)
    offset: (B, 3, D, H, W)
    returns dets (B, topk, 8), -1 padded.
    """
    b, _, d, h, w = cls.shape
    n = d * h * w
    stride_z = crop_size[0] / d
    stride_y = crop_size[1] / h
    stride_x = crop_size[2] / w

    # --- Stage 1 (Pallas): dense sigmoid over all anchors.  NCDHW -> (B, N) is free.
    scores = _sigmoid_scores(cls.reshape(b, n).astype(jnp.float32))        # (B, N)

    # --- Stage 2 (plain JAX, tiny): top-k, then bbox decode on the 60 winners only.
    topk_scores, topk_idx = lax.top_k(scores, topk)                        # (B, topk)
    idx3 = jnp.broadcast_to(topk_idx[:, None, :], (b, 3, topk))
    shp_k = jnp.take_along_axis(shape.reshape(b, 3, n).astype(jnp.float32), idx3, axis=2)
    off_k = jnp.take_along_axis(offset.reshape(b, 3, n).astype(jnp.float32), idx3, axis=2)

    # Anchor for each winner: flat idx -> (z, y, x), x fastest — matches both
    # torch.cartesian_prod(arange(d), arange(h), arange(w)) and the .view(B,C,-1) order.
    az = (topk_idx // (h * w)).astype(jnp.float32)
    ay = ((topk_idx // w) % h).astype(jnp.float32)
    ax = (topk_idx % w).astype(jnp.float32)
    cz = (az + off_k[:, 0]) * stride_z
    cy = (ay + off_k[:, 1]) * stride_y
    cx = (ax + off_k[:, 2]) * stride_x
    topk_boxes = jnp.concatenate(
        [jnp.stack([cz, cy, cx], axis=-1),
         2.0 * jnp.transpose(shp_k, (0, 2, 1))], axis=-1)                  # (B, topk, 6)
    valid = topk_scores > threshold

    def per_batch(sc, bx, vd):
        keep = _greedy_nms(_pairwise_iou_3d(bx), vd, nms_threshold, nms_topk)
        return _assemble_dets(sc, bx, keep)

    return jax.vmap(per_batch)(topk_scores, topk_boxes, valid)


# ---------------------------------------------------------------------------
# Pure-JAX reference mirroring the PyTorch forward (make_anchors + view/permute).
# ---------------------------------------------------------------------------
def _reference_forward(cls, shape, offset, *, crop_size=(64, 96, 96),
                       topk=60, threshold=0.15, nms_threshold=0.05, nms_topk=20):
    b, _, d, h, w = cls.shape
    strides = jnp.array([crop_size[0] / d, crop_size[1] / h, crop_size[2] / w],
                        jnp.float32)
    zz, yy, xx = jnp.meshgrid(jnp.arange(d, dtype=jnp.float32),
                              jnp.arange(h, dtype=jnp.float32),
                              jnp.arange(w, dtype=jnp.float32), indexing="ij")
    anchor_points = jnp.stack([zz.reshape(-1), yy.reshape(-1), xx.reshape(-1)], axis=-1)

    pred_scores = jnp.transpose(cls.reshape(b, 1, -1), (0, 2, 1))
    pred_scores = 1.0 / (1.0 + jnp.exp(-pred_scores))                     # (B, N, 1)
    pred_shapes = jnp.transpose(shape.reshape(b, 3, -1), (0, 2, 1))       # (B, N, 3)
    pred_offsets = jnp.transpose(offset.reshape(b, 3, -1), (0, 2, 1))     # (B, N, 3)
    c_zyx = (anchor_points[None] + pred_offsets) * strides[None, None, :]
    pred_bboxes = jnp.concatenate([c_zyx, 2.0 * pred_shapes], axis=-1)    # (B, N, 6)

    topk_scores, topk_idx = jax.lax.top_k(pred_scores[:, :, 0], topk)
    idx_b = jnp.broadcast_to(topk_idx[:, :, None], (b, topk, 6))
    topk_boxes = jnp.take_along_axis(pred_bboxes, idx_b, axis=1)          # (B, topk, 6)
    valid = topk_scores > threshold

    def per_batch(sc, bx, vd):
        keep = _greedy_nms(_pairwise_iou_3d(bx), vd, nms_threshold, nms_topk)
        return _assemble_dets(sc, bx, keep)

    dets = jax.vmap(per_batch)(topk_scores, topk_boxes, valid)
    return dets, pred_scores[:, :, 0]


if __name__ == "__main__":
    B, D, H, W = 2, 8, 12, 16
    N = D * H * W                      # 1536 = 12 * 128  -> lane-dense
    crop_size = (64, 96, 96)

    key = jax.random.PRNGKey(0)
    k1, k2, k3 = jax.random.split(key, 3)

    # Well-separated logits (permuted linspace) so the top-k ordering is unambiguous
    # when comparing the Pallas pipeline against the reference.
    cls = jax.random.permutation(k1, jnp.linspace(-3.0, 3.0, B * N, dtype=jnp.float32))
    cls = cls.reshape(B, 1, D, H, W)
    shape_p = jax.random.uniform(k2, (B, 3, D, H, W), minval=1.0, maxval=6.0,
                                 dtype=jnp.float32)
    offset_p = 0.3 * jax.random.normal(k3, (B, 3, D, H, W), dtype=jnp.float32)

    dets = jax.block_until_ready(
        detection_postprocess(cls, shape_p, offset_p, crop_size=crop_size))

    # ---- correctness checks vs. the pure-JAX mirror of the PyTorch forward ----
    dets_ref, scores_ref = jax.block_until_ready(
        _reference_forward(cls, shape_p, offset_p, crop_size=crop_size))

    scores_k = jax.block_until_ready(_sigmoid_scores(cls.reshape(B, N)))

    assert dets.shape == (B, 60, 8), dets.shape
    assert jnp.allclose(scores_k, scores_ref, atol=1e-5, rtol=1e-5), "score mismatch"
    assert jnp.allclose(dets, dets_ref, atol=1e-4, rtol=1e-5), "dets mismatch vs reference"

    print("KERNEL_OK")
</pallas_src>

<mosaic_0001>
module attributes {stable_mosaic.version = 11 : i64} {
  func.func @_sigmoid_kernel(%arg0: i32, %arg1: i32, %arg2: memref<1x16x128xf32, #tpu.memory_space<vmem>>, %arg3: memref<1x16x128xf32, #tpu.memory_space<vmem>>) attributes {dimension_semantics = [#tpu.dimension_semantics<parallel>, #tpu.dimension_semantics<parallel>], iteration_bounds = array<i64: 2, 1>, scalar_prefetch = 0 : i64, scratch_operands = 0 : i64, tpu.core_type = #tpu.core_type<tc>, window_params = [{transform_indices = @transform_0, window_bounds = array<i64: 1, 16, 128>}, {transform_indices = @transform_1, window_bounds = array<i64: 1, 16, 128>}]} {
    %c0 = arith.constant 0 : index
    %c0_0 = arith.constant 0 : index
    %c0_1 = arith.constant 0 : index
    %0 = vector.load %arg2[%c0, %c0_0, %c0_1] : memref<1x16x128xf32, #tpu.memory_space<vmem>>, vector<1x16x128xf32>
    %cst = arith.constant 0.000000e+00 : f32
    %1 = vector.broadcast %cst : f32 to vector<1x16x128xf32>
    %2 = arith.subf %1, %0 : vector<1x16x128xf32>
    %3 = math.exp %2 : vector<1x16x128xf32>
    %cst_2 = arith.constant 1.000000e+00 : f32
    %4 = vector.broadcast %cst_2 : f32 to vector<1x16x128xf32>
    %5 = arith.addf %4, %3 : vector<1x16x128xf32>
    %cst_3 = arith.constant 1.000000e+00 : f32
    %6 = vector.broadcast %cst_3 : f32 to vector<1x16x128xf32>
    %7 = arith.divf %6, %5 : vector<1x16x128xf32>
    %c0_4 = arith.constant 0 : index
    %c0_5 = arith.constant 0 : index
    %c0_6 = arith.constant 0 : index
    %8 = vector.load %arg3[%c0_4, %c0_5, %c0_6] : memref<1x16x128xf32, #tpu.memory_space<vmem>>, vector<1x16x128xf32>
    tpu.vector_store %arg3[%c0_4, %c0_5, %c0_6], %7 {strides = array<i32>} : memref<1x16x128xf32, #tpu.memory_space<vmem>>, vector<1x16x128xf32>,
    return
  }
  func.func @transform_0(%arg0: i32, %arg1: i32) -> (i32, i32, i32) {
    %c0_i32 = arith.constant 0 : i32
    %c0_i32_0 = arith.constant 0 : i32
    return %arg0, %arg1, %c0_i32 : i32, i32, i32
  }
  func.func @transform_1(%arg0: i32, %arg1: i32) -> (i32, i32, i32) {
    %c0_i32 = arith.constant 0 : i32
    %c0_i32_0 = arith.constant 0 : i32
    return %arg0, %arg1, %c0_i32 : i32, i32, i32
  }
}

</mosaic_0001>

<bundles_post_ra>
// kernel: tpu_custom_call.1
= control target key start
LH: loop header
LB: loop body
LE: loop exit
PB: predicated region body
PF: predicated region fallthrough
CT: control target
= control target key end

     0   :  { %6 = vsyncpa [#allocation3], 0  ;;  %s647_s0 = inlined_call_operand.hbm [shape: f32[2,16,128], index: 0, kind: input, shape index: {}]   ;;  %s648_s1 = inlined_call_operand.hbm [shape: f32[2,16,128], index: 1, kind: output, shape index: {}]  }
   0x1   :  { %8 = vsyncpa [#allocation3 + $0x1], 0 }
   0x2   :  { %9 = vsyncpa [#allocation4], 0 }
   0x3   :  { %11 = vsyncpa [#allocation4 + $0x1], 0  ;;  %s523_s6 = smov 0   ;;  %s525_s7 = smov 0  }
   0x4   :  { %s527_s8 = smov 0   ;;  %s529_s9 = smov 0  }
   0x5   :  { %s531_s10 = smov 0   ;;  %s533_s11 = smov 0  }
   0x6 LB: > { %s304_s12 = sadd.s32 4294967295, %s507_s11   ;;  %s305_s13 = sadd.s32 4294967294, %s507_s11   ;;  %s507_s11 = sphi %s533_s11, %s17_s11   ;;  %s503_s10 = sphi %s531_s10, %s657_s10   ;;  %s499_s9 = sphi %s529_s9, %s656_s9   ;;  %s495_s8 = sphi %s527_s8, %s655_s8   ;;  %s491_s7 = sphi %s525_s7, %s654_s7   ;;  %s487_s6 = sphi %s523_s6, %s653_s6  }
   0x7   : > { %s29_s14 = sadd.s32 1, %s503_s10  ;;  %s38_s15 = sadd.s32 1, %s495_s8 }
   0x8   : > { %p31_p0 = scmp.ge.s32.totalorder %s29_s14, 2  ;;  %p45_p1 = scmp.ne.s32.totalorder %s495_s8, %s491_s7 }
   0x9   : > { %p46_p2 = scmp.eq.s32.totalorder %s507_s11, 0  ;;  %p51_p3 = scmp.ne.s32.totalorder %s491_s7, %s487_s6 }
   0xa   : > { %s659_s14 = smov (%p31_p0, %s29_s14), 0  ;;  %p52_p5 = scmp.eq.s32.totalorder %s304_s12, 0 }
   0xb   : > { %p564_p4 = por %p46_p2, %p45_p1  ;;  %s33_s17 = ssub.s32 %s503_s10, %s659_s14 }
   0xc   : > { %p77_p6 = scmp.eq.s32.totalorder %s304_s12, 1  ;;  %p36_p7 = scmp.eq.s32.totalorder %s33_s17, 0 }
   0xd   : > { %p570_p8 = por %p52_p5, %p51_p3  ;;  %p83_p10 = scmp.eq.s32.totalorder %s305_s13, 1 }
   0xe   : > { %p574_p9 = por %p77_p6, %p45_p1  ;;  %p307_p12 = scmp.ge.s32.totalorder %s507_s11, 2 }
   0xf   : > { %s579_s20 = scalar_select %p36_p7, %s495_s8, %s38_s15  }
  0x10   : > { %p581_p11 = por %p83_p10, %p51_p3  ;;  %p333_p13 = scmp.lt.s32.totalorder %s507_s11, 2 }
  0x11   : > { %s103_s22 = sand.u32 1, %s495_s8   ;;  %s319_s24 = sshll.u32 %s503_s10, 4 }
  0x12   : > { %s308_s23 = sshll.u32 %s103_s22, 4  ;;  %s114_s27 = scalar_lea.hbm %s647_s0, %s319_s24 }
  0x13   : > { %s107_s28 = scalar_lea.vmem [#allocation2], %s308_s23  ;;  %s115_s30 = sshll.u32 %s114_s27, 4  ;;  %s116_s30 = int_to_ptr.hbm [resolvable:$true] %s115_s30 }
  0x14   : > { %s117_s29 = sshll.u32 %s107_s28, 4  ;;  %p326_p0 = pnand %p333_p13, %p564_p4  ;;  %s118_s29 = int_to_ptr.vmem [resolvable:$true] %s117_s29 }
  0x15   : > { %p311_p1 = scmp.ge.s32.totalorder %s507_s11, 1  ;;  %s104_s2 = scalar_lea.sflag [#allocation3], %s103_s22 }
  0x16   : > { %s509_s3 = smov 128   ;;  %s510_s4 = smov 8  }
  0x17   : > { %328 = dma.hbm_to_vmem [thread:$0]  (!%p326_p0), %s116_s30, 256, %s118_s29, %s104_s2, %s509_s3, %s509_s3, %s510_s4  }
  0x18   : > { %p125_p2 = scmp.lt.s32.totalorder %s507_s11, 3 }
  0x1a   : > { %p126_p3 = pnand %p311_p1, %p125_p2 }
  0x1b   : > { %s597_s5 = sand.u32 (!%p126_p3), 1, %s491_s7  }
  0x1c   : > { %129 = sbr.rel (%p126_p3) target bundleno = 70 (0x46), region = 24  ;;  %s312_s12 = sshll.u32 (!%p126_p3), %s597_s5, 4 }
  0x1d   : > { %s132_s13 = scalar_lea.sflag (!%p126_p3), [#allocation3], %s597_s5  ;;  %s135_s15 = scalar_lea.vmem (!%p126_p3), [#allocation2], %s312_s12 }
  0x21   : > { %478 = dma.done.wait (%p570_p8), %s132_s13, 256  }
  0x22   : > { %480 = vsyncadd (%p570_p8), %s132_s13, 4294967040  ;;  %v157_v0 = vld [vmem:[%s135_s15] sm:$0xff]  ;;  %v158_v1 = vld [vmem:[%s135_s15 + $0x8] sm:$0xff]  ;;  %s320_s16 = sshll.u32 %s499_s9, 4  ;;  %s154_s9 = scalar_lea.vmem [#allocation5], %s312_s12 }
  0x23   : > { %v159_v2 = vsub.f32 0.0, %v157_v0  ;;  %v160_v3 = vsub.f32 0.0, %v158_v1  ;;  %s213_s22 = scalar_lea.hbm %s648_s1, %s320_s16  ;;  %s214_s23 = sshll.u32 %s154_s9, 4  ;;  %s215_s23 = int_to_ptr.vmem [resolvable:$true] %s214_s23 }
  0x24   : > { %s216_s24 = sshll.u32 %s213_s22, 4  ;;  %s200_s25 = scalar_lea.sflag [#allocation4], %s597_s5  ;;  %s217_s24 = int_to_ptr.hbm [resolvable:$true] %s216_s24 }
  0x25   : > { %v161_v4 = vmul.f32 1.442695, %v159_v2  ;;  %v163_v5 = vmul.f32 1.442695, %v160_v3  ;;  %s439_s26 = sshra.s32 %s217_s24, 4  ;;  %s445_s30 = scalar_lea.hbm %s648_s1, 32  ;;  %s440_s26 = int_to_ptr.hbm [resolvable:$true] %s439_s26 }
  0x26   : > { %s441_s27 = scalar_lea.hbm %s440_s26, 16  ;;  %p446_p7 = scmp.lt.s32.totalorder %s440_s26, %s648_s1 }
  0x27   : > { %387 = vpow2.f32 %v161_v4  ;;  %p442_p4 = scmp.ne.s32.totalorder %s440_s26, %s441_s27  ;;  %p447_p8 = scmp.lt.s32.totalorder %s445_s30, %s441_s27 }
  0x28   : > { %389 = vpow2.f32 %v163_v5 }
  0x29   : > { %p443_p5 = pnand %p442_p4, %p574_p9  ;;  %p448_p10 = por %p447_p8, %p446_p7 }
  0x2b   : > { %p444_p6 = pneg %p443_p5 }
  0x2d   : > { %v388_v6 = vpop.eup %387  ;;  %p449_p13 = pnand %p448_p10, %p444_p6 }
  0x2e   : > { %v390_v7 = vpop.eup %389  ;;  %v165_v8 = vadd.f32 1.0, %v388_v6 }
  0x2f   : > { %v166_v9 = vadd.f32 1.0, %v390_v7 }
  0x30   : > { %391 = vrcp.f32 %v165_v8  ;;  %vm172_vm0 = vweird.f32 %v165_v8  ;;  %v178_v13 = vand.u32 2147483648, %v165_v8  ;;  %v176_v16 = vand.u32 2147483647, %v165_v8 }
  0x31   : > { %393 = vrcp.f32 %v166_v9  ;;  %v193_v17 = vand.u32 2147483648, %v166_v9  ;;  %vm187_vm2 = vweird.f32 %v166_v9  ;;  %v191_v19 = vand.u32 2147483647, %v166_v9 }
  0x32   : > { %v179_v21 = vor.u32 1.1754944e-38, %v178_v13  ;;  %vm177_vm5 = vcmp.eq.f32.partialorder %v176_v16, 8.507059e+37 }
  0x33   : > { %v194_v24 = vor.u32 1.1754944e-38, %v193_v17  ;;  %vm192_vm7 = vcmp.eq.f32.partialorder %v191_v19, 8.507059e+37 }
  0x36   : > { %v392_v10 = vpop.eup %391 }
  0x37   : > { %v394_v11 = vpop.eup %393  ;;  %v168_v12 = vmul.f32 %v392_v10, %v165_v8  ;;  %vm173_vm1 = vweird.f32 %v392_v10 }
  0x38   : > { %v183_v14 = vmul.f32 %v394_v11, %v166_v9  ;;  %vm188_vm3 = vweird.f32 %v394_v11  ;;  %vm174_vm4 = vmor %vm172_vm0, %vm173_vm1 }
  0x39   : > { %v169_v15 = vsub.f32 1.0, %v168_v12  ;;  %vm189_vm6 = vmor %vm187_vm2, %vm188_vm3 }
  0x3a   : > { %v184_v18 = vsub.f32 1.0, %v183_v14 }
  0x3b   : > { %v170_v20 = vmul.f32 %v392_v10, %v169_v15 }
  0x3c   : > { %v185_v22 = vmul.f32 %v394_v11, %v184_v18 }
  0x3d   : > { %v171_v23 = vadd.f32 %v392_v10, %v170_v20 }
  0x3e   : > { %v186_v25 = vadd.f32 %v394_v11, %v185_v22 }
  0x3f   : > { %v175_v26 = vsel %vm174_vm4, %v392_v10, %v171_v23 }
  0x40   : > { %v180_v27 = vsel %vm177_vm5, %v179_v21, %v175_v26  ;;  %v190_v28 = vsel %vm189_vm6, %v394_v11, %v186_v25 }
  0x41   : > { %197 = vst [vmem:[%s154_s9] sm:$0xff] %v180_v27  ;;  %v195_v29 = vsel %vm192_vm7, %v194_v24, %v190_v28 }
  0x42   : > { %198 = vst [vmem:[%s154_s9 + $0x8] sm:$0xff] %v195_v29 }
  0x43   : > { %452 = shalt.err (!%p449_p13)
}
  0x44   : > { %s511_s4 = smov 128   ;;  %s512_s5 = smov 8  }
  0x45   : > { %323 = dma.vmem_to_hbm [thread:$0]  (%p574_p9), %s215_s23, 256, %s217_s24, %s200_s25, %s511_s4, %s511_s4, %s512_s5  }
  0x46 PF: > { %s231_s12 = sand.u32 1, %s487_s6   ;;  %p330_p0 = pnand %p307_p12, %p581_p11 }
  0x47   : > { %s232_s13 = scalar_lea.sflag [#allocation4], %s231_s12 }
  0x48   : > { %p331_p1 = pneg %p330_p0 }
  0x4a   : > { %482 = dma.done.wait (%p331_p1), %s232_s13, 256  }
  0x4b   : > { %484 = vsyncadd (%p331_p1), %s232_s13, 4294967040  ;;  %s17_s11 = sadd.s32 1, %s507_s11   ;;  %s653_s6 = smov %s491_s7 }
  0x4c   : > { %p14_p2 = scmp.ge.s32.totalorder %s17_s11, 4   ;;  %s654_s7 = smov %s495_s8 }
  0x4d   : > { %s655_s8 = smov %s579_s20  ;;  %s656_s9 = smov %s503_s10 }
  0x4e   : > { %s657_s10 = smov %s659_s14  ;;  %16 = sbr.rel (!%p14_p2) target bundleno = 6 (0x6), region = 69 }
  0x53   :  { %238 = vsyncpa [#allocation3], 1 }
  0x54   :  { %240 = vsyncpa [#allocation3 + $0x1], 1 }
  0x55   :  { %241 = vsyncpa [#allocation4], 1 }
  0x56   :  { %243 = vsyncpa [#allocation4 + $0x1], 1 }

</bundles_post_ra>
